<compile_context>
chip_gen: v7x
topology: tpu7x:2x2x1
jax: 0.10.0
libtpu: 0.0.40
codegen_flags: <defaults>
</compile_context>

<pallas_src>
import jax
import jax.numpy as jnp
from jax.experimental import pallas as pl
from jax.experimental.pallas import tpu as pltpu


def _round_up(n: int, m: int) -> int:
    return ((n + m - 1) // m) * m


def _rbf_kernel(x_ref, xsq_ref, ct_ref, csng_ref, o_ref):
    # x_ref   : (tb, D)  batch tile of inputs (f32 or bf16, cast in wrapper)
    # xsq_ref : (tb, 1)  ||x||^2 per row (f32, precomputed)
    # ct_ref  : (D, to)  -2 * centers^T  (f32 or bf16; -2 folded in wrapper)
    # csng_ref: (2, to)  row 0: ||c||^2, row 1: -exp(2*log_sigmas)  (f32)
    # o_ref   : (tb, to) output tile
    xc = jnp.dot(x_ref[...], ct_ref[...],
                 preferred_element_type=jnp.float32)                    # MXU
    sq_dist = jnp.maximum(xsq_ref[...] + xc + csng_ref[0:1, :], 0.0)    # VPU
    # exp(-(exp(ls)*r)^2) == exp(neg_gamma * d2): a single EUP exp.
    o_ref[...] = jnp.exp(sq_dist * csng_ref[1:2, :]).astype(o_ref.dtype)


def rbf_forward(x, centers, log_sigmas, *, batch_tile=None, out_tile=None,
                use_bf16_matmul=False, out_dtype=jnp.float32,
                vmem_budget_bytes=32 << 20):
    """Pallas RBF forward (gaussian basis, L2 norm).

    x          : (B, D)  float
    centers    : (O, D)  float
    log_sigmas : (O,)    float
    returns    : (B, O)  out_dtype

    use_bf16_matmul=True halves MXU-operand HBM traffic and uses the native
    bf16 MXU on v6e/v7x (recommended for large D); it perturbs outputs at the
    ~1e-3 level, so it is off by default.
    """
    B, D = x.shape
    O, D2 = centers.shape
    assert D == D2

    x = x.astype(jnp.float32)
    centers = centers.astype(jnp.float32)
    log_sigmas = log_sigmas.astype(jnp.float32)

    mm_dtype = jnp.bfloat16 if use_bf16_matmul else jnp.float32
    x_bpe = jnp.dtype(mm_dtype).itemsize
    c_bpe = x_bpe
    out_bpe = jnp.dtype(out_dtype).itemsize

    # Hoisted terms, computed once per call in f32 (not once per grid step).
    x_sq = jnp.sum(x * x, axis=-1, keepdims=True)              # (B, 1)
    c_sq = jnp.sum(centers * centers, axis=-1)                  # (O,)
    neg_gamma = -jnp.exp(2.0 * log_sigmas)                      # (O,)
    csng = jnp.stack([c_sq, neg_gamma], axis=0)                 # (2, O)
    centers_t = (-2.0 * centers).T                              # (D, O), -2 folded

    # Cast MXU operands at the DMA boundary (wrapper), never inside the kernel.
    x_mm = x.astype(mm_dtype)
    centers_t = centers_t.astype(mm_dtype)

    # ---- tile selection -------------------------------------------------
    Op128 = _round_up(O, 128)
    tb = batch_tile or min(512, _round_up(B, 8))
    if out_tile is not None:
        to = out_tile
    elif D * Op128 * c_bpe <= (8 << 20):
        # Centers fit comfortably: keep the whole centers slab resident for
        # the entire run (block index never changes -> single DMA).
        to = Op128
    else:
        to = min(1024, Op128)

    def _footprint(tb_, to_):
        per = (tb_ * D * x_bpe            # x tile
               + tb_ * 128 * 4            # x_sq tile (lane-padded)
               + D * to_ * c_bpe          # centers tile
               + 8 * to_ * 4              # c_sq / neg_gamma tile (sublane-padded)
               + tb_ * to_ * out_bpe)     # output tile
        return 2 * per                    # double-buffered

    # Shrink tiles until the double-buffered working set fits the budget
    # (32 MiB default: safe on v7x's 64 MiB VMEM, ample on v5e/v6e's 128 MiB).
    while _footprint(tb, to) > vmem_budget_bytes and to > 128:
        to = max(128, _round_up(to // 2, 128))
    while _footprint(tb, to) > vmem_budget_bytes and tb > 8:
        tb = max(8, _round_up(tb // 2, 8))
    # TODO(synk): for very large D (where a single (D, 128) centers tile alone
    # exceeds the VMEM budget) add a K-reduction grid axis over D with an f32
    # accumulator scratch + pl.when init/finalize ("arbitrary" semantics).

    assert tb % 8 == 0, "batch tile must be a multiple of 8 sublanes"
    assert to % 128 == 0, "output tile must be a multiple of 128 lanes"

    Op = _round_up(O, to)
    # Pad only the small centers-side arrays on the O axis.  neg_gamma pads
    # with 0 -> padded columns evaluate to exp(0)=1 and are sliced off below.
    # x / x_sq are NOT padded: Pallas masks the ragged last batch block
    # (OOB reads only feed OOB output rows, whose writes are discarded).
    if Op != O:
        centers_t = jnp.pad(centers_t, ((0, 0), (0, Op - O)))
        csng = jnp.pad(csng, ((0, 0), (0, Op - O)))

    n_i = pl.cdiv(B, tb)
    n_j = Op // to
    grid = (n_i, n_j)

    # j is innermost, so centers re-stream once per batch row-block unless
    # they are fully resident (n_j == 1, the common RBF case).
    centers_reads = n_i if n_j > 1 else 1
    cost = pl.CostEstimate(
        flops=2 * B * Op * D + 3 * B * Op,
        transcendentals=B * Op,
        bytes_accessed=(B * D * x_bpe + B * 4
                        + centers_reads * (D * Op * c_bpe + 2 * Op * 4)
                        + B * Op * out_bpe),
    )

    out_padded = pl.pallas_call(
        _rbf_kernel,
        out_shape=jax.ShapeDtypeStruct((B, Op), out_dtype),
        grid_spec=pltpu.PrefetchScalarGridSpec(
            num_scalar_prefetch=0,
            grid=grid,
            in_specs=[
                pl.BlockSpec((tb, D), lambda i, j: (i, 0)),   # x tile
                pl.BlockSpec((tb, 1), lambda i, j: (i, 0)),   # ||x||^2 tile
                pl.BlockSpec((D, to), lambda i, j: (0, j)),   # -2*centers^T tile
                pl.BlockSpec((2, to), lambda i, j: (0, j)),   # ||c||^2 / -gamma tile
            ],
            out_specs=pl.BlockSpec((tb, to), lambda i, j: (i, j)),
        ),
        compiler_params=pltpu.CompilerParams(
            dimension_semantics=("parallel", "parallel"),
            vmem_limit_bytes=int(min(64 << 20,
                                     _footprint(tb, to) + (16 << 20))),
        ),
        cost_estimate=cost,
    )(x_mm, x_sq, centers_t, csng)

    return out_padded[:, :O]


def _rbf_reference(x, centers, log_sigmas):
    # Pure-JAX reference mirroring the PyTorch forward exactly.
    diff = x[:, None, :] - centers[None, :, :]
    r = jnp.linalg.norm(diff, ord=2, axis=-1)
    eps_r = jnp.exp(log_sigmas)[None, :] * r
    return jnp.exp(-(eps_r ** 2))


if __name__ == "__main__":
    key = jax.random.PRNGKey(0)
    B, in_features, out_features = 8, 32, 16

    k_x, k_c = jax.random.split(key)
    x = jax.random.normal(k_x, (B, in_features), dtype=jnp.float32)
    # Parameter init matches nn.init.normal_(centers, 0, 1) / constant_(log_sigmas, 0)
    centers = jax.random.normal(k_c, (out_features, in_features), dtype=jnp.float32)
    log_sigmas = jnp.zeros((out_features,), dtype=jnp.float32)

    out = rbf_forward(x, centers, log_sigmas)
    out = jax.block_until_ready(out)

    ref = _rbf_reference(x, centers, log_sigmas)
    assert out.shape == (B, out_features)
    assert jnp.allclose(out, ref, atol=1e-5, rtol=1e-5)

    print("KERNEL_OK")
</pallas_src>

<mosaic_0001>
module attributes {stable_mosaic.version = 11 : i64} {
  func.func @_rbf_kernel(%arg0: i32, %arg1: i32, %arg2: memref<8x32xf32, #tpu.memory_space<vmem>>, %arg3: memref<8x1xf32, #tpu.memory_space<vmem>>, %arg4: memref<32x128xf32, #tpu.memory_space<vmem>>, %arg5: memref<2x128xf32, #tpu.memory_space<vmem>>, %arg6: memref<8x128xf32, #tpu.memory_space<vmem>>) attributes {dimension_semantics = [#tpu.dimension_semantics<parallel>, #tpu.dimension_semantics<parallel>], iteration_bounds = array<i64: 1, 1>, scalar_prefetch = 0 : i64, scratch_operands = 0 : i64, tpu.core_type = #tpu.core_type<tc>, window_params = [{transform_indices = @transform_0, window_bounds = array<i64: 8, 32>}, {transform_indices = @transform_1, window_bounds = array<i64: 8, 1>}, {transform_indices = @transform_2, window_bounds = array<i64: 32, 128>}, {transform_indices = @transform_3, window_bounds = array<i64: 2, 128>}, {transform_indices = @transform_4, window_bounds = array<i64: 8, 128>}]} {
    %c0 = arith.constant 0 : index
    %c0_0 = arith.constant 0 : index
    %0 = vector.load %arg2[%c0, %c0_0] : memref<8x32xf32, #tpu.memory_space<vmem>>, vector<8x32xf32>
    %c0_1 = arith.constant 0 : index
    %c0_2 = arith.constant 0 : index
    %1 = vector.load %arg4[%c0_1, %c0_2] : memref<32x128xf32, #tpu.memory_space<vmem>>, vector<32x128xf32>
    %cst = arith.constant dense<0.000000e+00> : vector<8x128xf32>
    %2 = tpu.matmul %0, %1, %cst {dimension_numbers = #tpu.dot_dimension_numbers<[1], [0], [0], [1], [0, 0, 1, 1], [], []>} : vector<8x32xf32>, vector<32x128xf32>, vector<8x128xf32> -> vector<8x128xf32>
    %c0_3 = arith.constant 0 : index
    %c0_4 = arith.constant 0 : index
    %3 = vector.load %arg3[%c0_3, %c0_4] : memref<8x1xf32, #tpu.memory_space<vmem>>, vector<8x1xf32>
    %4 = vector.broadcast %3 : vector<8x1xf32> to vector<8x128xf32>
    %5 = arith.addf %4, %2 : vector<8x128xf32>
    %c0_5 = arith.constant 0 : index
    %c0_6 = arith.constant 0 : index
    %6 = vector.load %arg5[%c0_5, %c0_6] : memref<2x128xf32, #tpu.memory_space<vmem>>, vector<1x128xf32>
    %7 = vector.broadcast %6 : vector<1x128xf32> to vector<8x128xf32>
    %8 = arith.addf %5, %7 : vector<8x128xf32>
    %cst_7 = arith.constant 0.000000e+00 : f32
    %9 = vector.broadcast %cst_7 : f32 to vector<8x128xf32>
    %10 = arith.maximumf %8, %9 : vector<8x128xf32>
    %c1 = arith.constant 1 : index
    %c0_8 = arith.constant 0 : index
    %11 = vector.load %arg5[%c1, %c0_8] : memref<2x128xf32, #tpu.memory_space<vmem>>, vector<1x128xf32>
    %12 = vector.broadcast %11 : vector<1x128xf32> to vector<8x128xf32>
    %13 = arith.mulf %10, %12 : vector<8x128xf32>
    %14 = math.exp %13 : vector<8x128xf32>
    %c0_9 = arith.constant 0 : index
    %c0_10 = arith.constant 0 : index
    %15 = vector.load %arg6[%c0_9, %c0_10] : memref<8x128xf32, #tpu.memory_space<vmem>>, vector<8x128xf32>
    tpu.vector_store %arg6[%c0_9, %c0_10], %14 {strides = array<i32>} : memref<8x128xf32, #tpu.memory_space<vmem>>, vector<8x128xf32>,
    return
  }
  func.func @transform_0(%arg0: i32, %arg1: i32) -> (i32, i32) {
    %c0_i32 = arith.constant 0 : i32
    %c0_i32_0 = arith.constant 0 : i32
    return %arg0, %c0_i32 : i32, i32
  }
  func.func @transform_1(%arg0: i32, %arg1: i32) -> (i32, i32) {
    %c0_i32 = arith.constant 0 : i32
    %c0_i32_0 = arith.constant 0 : i32
    return %arg0, %c0_i32 : i32, i32
  }
  func.func @transform_2(%arg0: i32, %arg1: i32) -> (i32, i32) {
    %c0_i32 = arith.constant 0 : i32
    %c0_i32_0 = arith.constant 0 : i32
    return %c0_i32, %arg1 : i32, i32
  }
  func.func @transform_3(%arg0: i32, %arg1: i32) -> (i32, i32) {
    %c0_i32 = arith.constant 0 : i32
    %c0_i32_0 = arith.constant 0 : i32
    return %c0_i32, %arg1 : i32, i32
  }
  func.func @transform_4(%arg0: i32, %arg1: i32) -> (i32, i32) {
    %c0_i32 = arith.constant 0 : i32
    return %arg0, %arg1 : i32, i32
  }
}

</mosaic_0001>

<bundles_post_ra>
// kernel: tpu_custom_call.1
= control target key start
LH: loop header
LB: loop body
LE: loop exit
PB: predicated region body
PF: predicated region fallthrough
CT: control target
= control target key end

     0   :  { %9 = vsyncpa [#allocation3], 0  ;;  %s302_s0 = inlined_call_operand.vmem [shape: f32[8,32], index: 0, kind: input, shape index: {}]   ;;  %s303_s1 = inlined_call_operand.vmem [shape: f32[8,1], index: 1, kind: input, shape index: {}]   ;;  %s304_s2 = inlined_call_operand.hbm [shape: f32[32,128], index: 2, kind: input, shape index: {}]   ;;  %s305_s3 = inlined_call_operand.vmem [shape: f32[2,128], index: 3, kind: input, shape index: {}]   ;;  %s306_s4 = inlined_call_operand.hbm [shape: f32[8,128], index: 4, kind: output, shape index: {}]  }
   0x1   :  { %10 = vsyncpa [#allocation4], 0  ;;  %s233_s15 = smov [#allocation2]   ;;  %s185_s19 = scalar_lea.hbm %s304_s2, 512 }
   0x2   :  { %s20_s16 = sshll.u32 %s233_s15, 4  ;;  %p186_p0 = scmp.ne.s32.totalorder %s304_s2, %s185_s19  ;;  %s21_s16 = int_to_ptr.vmem [resolvable:$true] %s20_s16 }
   0x3   :  { %p189_p1 = scmp.lt.u32.totalorder %s185_s19, %s304_s2 }
   0x5   :  { %p191_p2 = pnand %p189_p1, %p186_p0 }
   0x7   :  { %194 = shalt.err (!%p191_p2)
}
   0x8   :  { %s195_s24 = scalar_lea.vmem %s21_s16, 512  ;;  %p200_p4 = scmp.lt.s32.totalorder %s21_s16, %s21_s16 }
   0x9   :  { %p196_p3 = scmp.ne.s32.totalorder %s21_s16, %s195_s24  ;;  %p201_p5 = scmp.lt.s32.totalorder %s195_s24, %s195_s24 }
   0xb   :  { %p202_p6 = por %p201_p5, %p200_p4 }
   0xd   :  { %p203_p7 = pnand %p202_p6, %p196_p3 }
   0xf   :  { %206 = shalt.err (!%p203_p7)
}
  0x10   :  { %s234_s25 = smov 128   ;;  %s235_s26 = smov 8  }
  0x11   :  { %26 = dma.hbm_to_vmem [thread:$0]  %s304_s2, 512, %s21_s16, [#allocation3], %s234_s25, %s234_s25, %s235_s26  }
  0x12   :  { %229 = dma.done.wait [#allocation3], 512  }
  0x13   :  { %230 = vsyncadd [#allocation3], 4294966784  ;;  %v236_v0 = vmov 0.0|0.0   ;;  %vm237_vm0 = vmmov 0   ;;  %v238_v1 = vmov 0.0   ;;  %v239_v2 = vmov 0  }
  0x14   :  { %168 = vmatprep.subr.bf16.mxu0 %v236_v0  ;;  %165 = vmatprep.mubr.msk.f32.mxu0 %vm237_vm0, %v238_v1  ;;  %v33_v3 = vld [vmem:[#allocation2] sm:$0xff]  ;;  %v34_v4 = vld [vmem:[#allocation2 + $0x8] sm:$0xff]  ;;  %v35_v5 = vld [vmem:[#allocation2 + $0x10] sm:$0xff]  ;;  %vm37_vm1 = vcmask 261120  }
  0x15   :  { %182 = vset.pattern.permute.xlu0 %v239_v2  ;;  %v169_v6 = vpack.c.bf16 %v34_v4, %v33_v3  ;;  %v36_v7 = vld [vmem:[#allocation2 + $0x18] sm:$0xff]  ;;  %v111_v8 = vld [vmem:[%s303_s1] sm:$0xff] }
  0x16   :  { %114 = vperm.xlu0 %182, %v111_v8   ;;  %v172_v9 = vpack.c.bf16 %v36_v7, %v35_v5  ;;  %v32_v10 = vld [vmem:[%s302_s0] sm:$0xff]  ;;  %s240_s0 = smov [#allocation5]  }
  0x17   :  { %170 = vmatpush3.bf16.msra.mxu0 %v169_v6  ;;  %v150_v13 = vld [vmem:[%s305_s3] ss:$0 sm:$0xff]  ;;  %v151_v17 = vld [vmem:[%s305_s3 + $0x1] ss:$0 sm:$0xff]  ;;  %s140_s9 = sshll.u32 %s240_s0, 4  ;;  %s141_s9 = int_to_ptr.vmem [resolvable:$true] %s140_s9 }
  0x18   :  { %171 = vmatprep.subr.bf16.mxu0 %v236_v0  ;;  %s207_s10 = scalar_lea.vmem %s141_s9, 128  ;;  %p212_p9 = scmp.lt.s32.totalorder %s141_s9, %s141_s9 }
  0x19   :  { %p208_p8 = scmp.ne.s32.totalorder %s141_s9, %s207_s10  ;;  %p213_p10 = scmp.lt.s32.totalorder %s207_s10, %s207_s10 }
  0x1b   :  { %173 = vmatpush3.bf16.msra.mxu0 %v172_v9  ;;  %p214_p11 = por %p213_p10, %p212_p9 }
  0x1d   :  { %p215_p12 = pnand %p214_p11, %p208_p8 }
  0x1e   :  { %166 = vmatmul.mubr.msk.f32.vlgmr.msra.gmra.mrb[0].mxu0 %vm37_vm1, %v32_v10 }
  0x95   :  { %v115_v11 = vpop.permute.xlu0 %114 }
  0xf1   :  { %v107_v12 = vpop.f32.mrb[0].mxu0 }
  0xf2   :  { %v117_v14 = vadd.f32 %v115_v11, %v107_v12  ;;  %v167_v15 = vpop.f32.mrb[1].mxu0 }
  0xf4   :  { %v123_v16 = vadd.f32 %v150_v13, %v117_v14 }
  0xf6   :  { %v124_v18 = vmax.f32 %v123_v16, 0.0 }
  0xf8   :  { %v130_v19 = vmul.f32 %v151_v17, %v124_v18 }
  0xfa   :  { %v131_v20 = vmul.f32 1.442695, %v130_v19 }
  0xfc   :  { %183 = vpow2.f32 %v131_v20 }
 0x106   :  { %v184_v21 = vpop.eup %183 }
 0x107   :  { %133 = vst [vmem:[#allocation5] sm:$0xff] %v184_v21 }
 0x108   :  { %218 = shalt.err (!%p215_p12)
}
 0x109   :  { %s219_s3 = scalar_lea.hbm %s306_s4, 128 }
 0x10a   :  { %p220_p13 = scmp.ne.s32.totalorder %s306_s4, %s219_s3  ;;  %p223_p0 = scmp.lt.u32.totalorder %s219_s3, %s306_s4 }
 0x10c   :  { %p225_p1 = pnand %p223_p0, %p220_p13 }
 0x10e   :  { %228 = shalt.err (!%p225_p1)
}
 0x10f   :  { %143 = dma.vmem_to_hbm [thread:$0]  %s141_s9, 128, %s306_s4, [#allocation4]  }
 0x110   :  { %231 = dma.done.wait [#allocation4], 128  }
 0x111   :  { %232 = vsyncadd [#allocation4], 4294967168 }
 0x112   :  { %147 = vsyncpa [#allocation3], 1 }
 0x113   :  { %148 = vsyncpa [#allocation4], 1 }

</bundles_post_ra>
